<compile_context>
chip_gen: v5e
topology: v5e:2x2
jax: 0.10.0
libtpu: 0.0.40
codegen_flags: <defaults>
</compile_context>

<pallas_src>
import jax
import jax.numpy as jnp
from jax.experimental import pallas as pl
from jax.experimental.pallas import tpu as pltpu


# ----------------------------- Pallas kernel ---------------------------------
def gru_disc_kernel(x_ref, wif_ref, whf_ref, bif_ref, bhn_ref, wok_ref, bo_ref,
                    out_ref, hs_scr):
    """Whole-sequence GRU + output head in a single invocation.

    x_ref  : (T*B, IN)  time-major rows: row t*B+b holds features of (t, b)
    wif_ref: (IN, 3H)   fused input->gate weights, gate order [r | z | n]
    whf_ref: (H, 3H)    fused hidden->gate weights, gate order [r | z | n]
    bif_ref: (1, 3H)    folded biases [bi_r+bh_r | bi_z+bh_z | bi_n]
    bhn_ref: (1, H)     bh_n (applied inside r * (...))
    wok_ref: (T*H, T)   block-diagonal output head = kron(eye(T), wo)
    bo_ref : (1, 1)     output bias
    out_ref: (B, T)     sigmoid(logits), lane-dense, written once
    hs_scr : (B, T*H)   hidden states for all steps (VMEM scratch)
    """
    H = whf_ref.shape[0]
    B, T = out_ref.shape

    # ---- phase 1: input projection for ALL time-steps (one MXU matmul) ----
    gi_all = jnp.dot(x_ref[...], wif_ref[...],
                     preferred_element_type=jnp.float32)        # (T*B, 3H)
    gi_all = gi_all + bif_ref[...]                               # broadcast (1,3H)

    wh = whf_ref[...]                                            # (H, 3H)
    bh_n = bhn_ref[...]                                          # (1, H)

    # ---- phase 2: sequential recurrence (only the hidden matmul per step) ----
    # T is small and static -> fully unrolled at trace time; all slice indices
    # are static sublane/lane slices.
    h = jnp.zeros((B, H), jnp.float32)
    for t in range(T):
        gi = gi_all[t * B:(t + 1) * B, :]                        # (B, 3H)
        gh = jnp.dot(h, wh, preferred_element_type=jnp.float32)  # (B, 3H)
        r = jax.nn.sigmoid(gi[:, 0:H] + gh[:, 0:H])
        z = jax.nn.sigmoid(gi[:, H:2 * H] + gh[:, H:2 * H])
        n = jnp.tanh(gi[:, 2 * H:3 * H] + r * (gh[:, 2 * H:3 * H] + bh_n))
        h = (1.0 - z) * n + z * h
        hs_scr[:, t * H:(t + 1) * H] = h                         # static lane slice

    # ---- phase 3: output head for ALL time-steps at once (one MXU matmul) ----
    logits = jnp.dot(hs_scr[...], wok_ref[...],
                     preferred_element_type=jnp.float32) + bo_ref[...]  # (B, T)
    out_ref[...] = jax.nn.sigmoid(logits)


def gru_head_pallas(x_tb, wif, whf, bif, bhn, wok, bo, *, T, B):
    """Run the fused GRU + output head with one pallas_call."""
    TB, IN = x_tb.shape
    H = whf.shape[0]

    out = pl.pallas_call(
        gru_disc_kernel,
        out_shape=jax.ShapeDtypeStruct((B, T), jnp.float32),
        grid_spec=pltpu.PrefetchScalarGridSpec(
            num_scalar_prefetch=0,
            grid=(1,),
            in_specs=[
                pl.BlockSpec((TB, IN), lambda i: (0, 0)),
                pl.BlockSpec((IN, 3 * H), lambda i: (0, 0)),
                pl.BlockSpec((H, 3 * H), lambda i: (0, 0)),
                pl.BlockSpec((1, 3 * H), lambda i: (0, 0)),
                pl.BlockSpec((1, H), lambda i: (0, 0)),
                pl.BlockSpec((T * H, T), lambda i: (0, 0)),
                pl.BlockSpec((1, 1), lambda i: (0, 0)),
            ],
            out_specs=pl.BlockSpec((B, T), lambda i: (0, 0)),
            scratch_shapes=[pltpu.VMEM((B, T * H), jnp.float32)],
        ),
        compiler_params=pltpu.CompilerParams(
            dimension_semantics=("arbitrary",),
        ),
    )(x_tb, wif, whf, bif, bhn, wok, bo)
    return out  # (B, T)


# ------------------------------ Model wrapper ---------------------------------
def init_params(key, query_size, doc_size, vtype_size, embed_size, gru_hidden):
    E, H = embed_size, gru_hidden
    IN = 3 * E
    ks = jax.random.split(key, 10)
    s = 0.1
    return {
        "query_emb":  s * jax.random.normal(ks[0], (query_size, E), jnp.float32),
        "doc_emb":    s * jax.random.normal(ks[1], (doc_size, E), jnp.float32),
        "vtype_emb":  s * jax.random.normal(ks[2], (vtype_size, E // 2), jnp.float32),
        "action_emb": s * jax.random.normal(ks[3], (2, E // 2), jnp.float32),
        "wi": s * jax.random.normal(ks[4], (3, IN, H), jnp.float32),  # gates [r,z,n]
        "wh": s * jax.random.normal(ks[5], (3, H, H), jnp.float32),
        "bi": s * jax.random.normal(ks[6], (3, 1, H), jnp.float32),
        "bh": s * jax.random.normal(ks[7], (3, 1, H), jnp.float32),
        "wo": s * jax.random.normal(ks[8], (H, 1), jnp.float32),
        "bo": s * jax.random.normal(ks[9], (1, 1), jnp.float32),
    }


def discriminator_forward(params, query, doc, vtype, action):
    """Mirrors Discriminator.forward (eval mode: dropout = identity)."""
    # TODO(synk): dropout is a no-op here (inference semantics); training-mode
    # dropout would need pltpu.prng_random_bits inside the kernel.
    # TODO(synk): for large batches, add a leading "parallel" grid axis over
    # batch tiles (own h state per tile) to occupy v7x's second TensorCore.
    B, T = query.shape
    q_e = jnp.take(params["query_emb"], query, axis=0)    # (B, T, E)
    d_e = jnp.take(params["doc_emb"], doc, axis=0)        # (B, T, E)
    v_e = jnp.take(params["vtype_emb"], vtype, axis=0)    # (B, T, E//2)
    a_e = jnp.take(params["action_emb"], action, axis=0)  # (B, T, E//2)
    x = jnp.concatenate([q_e, d_e, v_e, a_e], axis=2).astype(jnp.float32)  # (B,T,3E)
    IN = x.shape[-1]
    H = params["wh"].shape[-1]

    # Time-major, flattened to 2-D rows so the kernel only ever sees 2-D matmuls.
    x_tb = jnp.transpose(x, (1, 0, 2)).reshape(T * B, IN)  # row t*B+b -> (t, b)

    wi, wh, bi, bh = params["wi"], params["wh"], params["bi"], params["bh"]
    # Fuse gate weights [r|z|n] along the output (lane) axis.
    wif = jnp.concatenate([wi[0], wi[1], wi[2]], axis=1)   # (IN, 3H)
    whf = jnp.concatenate([wh[0], wh[1], wh[2]], axis=1)   # (H, 3H)
    # Fold r/z biases (bi+bh always sum); keep bh_n separate (inside r*(...)).
    bif = jnp.concatenate([bi[0] + bh[0], bi[1] + bh[1], bi[2]], axis=1)  # (1, 3H)
    bhn = bh[2]                                            # (1, H)
    # Block-diagonal output head so the kernel emits a lane-dense (B, T) slab.
    wok = jnp.kron(jnp.eye(T, dtype=jnp.float32), params["wo"])  # (T*H, T)

    logits = gru_head_pallas(x_tb, wif, whf, bif, bhn, wok, params["bo"],
                             T=T, B=B)                     # (B, T)
    return logits[:, 1:]                                   # (B, T-1)


# ------------------------------ Pure-JAX reference ----------------------------
def discriminator_reference(params, query, doc, vtype, action):
    q_e = jnp.take(params["query_emb"], query, axis=0)
    d_e = jnp.take(params["doc_emb"], doc, axis=0)
    v_e = jnp.take(params["vtype_emb"], vtype, axis=0)
    a_e = jnp.take(params["action_emb"], action, axis=0)
    x = jnp.concatenate([q_e, d_e, v_e, a_e], axis=2).astype(jnp.float32)  # (B,T,3E)
    B, T, IN = x.shape
    H = params["wh"].shape[-1]
    wi, wh, bi, bh = params["wi"], params["wh"], params["bi"], params["bh"]

    def step(h, xt):
        r = jax.nn.sigmoid(xt @ wi[0] + bi[0] + h @ wh[0] + bh[0])
        z = jax.nn.sigmoid(xt @ wi[1] + bi[1] + h @ wh[1] + bh[1])
        n = jnp.tanh(xt @ wi[2] + bi[2] + r * (h @ wh[2] + bh[2]))
        h_new = (1.0 - z) * n + z * h
        return h_new, h_new

    _, hs = jax.lax.scan(step, jnp.zeros((B, H), jnp.float32),
                         jnp.transpose(x, (1, 0, 2)))
    logits = jax.nn.sigmoid(hs @ params["wo"] + params["bo"])  # (T, B, 1)
    logits = jnp.transpose(logits[..., 0], (1, 0))
    return logits[:, 1:]


# ---------------------------------- main --------------------------------------
if __name__ == "__main__":
    # Small, forward-consistent shapes
    batch_size   = 2
    max_doc_num  = 8     # sequence length T
    embed_size   = 32
    gru_hidden   = 32
    query_size   = 50
    doc_size     = 60
    vtype_size   = 10

    key = jax.random.PRNGKey(0)
    k_par, k_q, k_d, k_v, k_a = jax.random.split(key, 5)

    params = init_params(k_par, query_size, doc_size, vtype_size,
                         embed_size, gru_hidden)

    query  = jax.random.randint(k_q, (batch_size, max_doc_num), 0, query_size)
    doc    = jax.random.randint(k_d, (batch_size, max_doc_num), 0, doc_size)
    vtype  = jax.random.randint(k_v, (batch_size, max_doc_num), 0, vtype_size)
    action = jax.random.randint(k_a, (batch_size, max_doc_num), 0, 2)

    logits = discriminator_forward(params, query, doc, vtype, action)
    logits = jax.block_until_ready(logits)

    ref = jax.block_until_ready(
        discriminator_reference(params, query, doc, vtype, action))

    assert logits.shape == (batch_size, max_doc_num - 1), logits.shape
    max_err = float(jnp.max(jnp.abs(logits - ref)))
    assert max_err < 1e-3, f"Pallas kernel mismatch vs reference: {max_err}"

    print("KERNEL_OK")
</pallas_src>

<mosaic_0001>
module attributes {stable_mosaic.version = 11 : i64} {
  func.func @gru_disc_kernel(%arg0: i32, %arg1: memref<16x96xf32, #tpu.memory_space<vmem>>, %arg2: memref<96x96xf32, #tpu.memory_space<vmem>>, %arg3: memref<32x96xf32, #tpu.memory_space<vmem>>, %arg4: memref<1x96xf32, #tpu.memory_space<vmem>>, %arg5: memref<1x32xf32, #tpu.memory_space<vmem>>, %arg6: memref<256x8xf32, #tpu.memory_space<vmem>>, %arg7: memref<1x1xf32, #tpu.memory_space<vmem>>, %arg8: memref<2x8xf32, #tpu.memory_space<vmem>>, %arg9: memref<2x256xf32, #tpu.memory_space<vmem>>) attributes {dimension_semantics = [#tpu.dimension_semantics<arbitrary>], iteration_bounds = array<i64: 1>, scalar_prefetch = 0 : i64, scratch_operands = 1 : i64, tpu.core_type = #tpu.core_type<tc>, window_params = [{pipeline_mode = #tpu.pipeline_mode<synchronous>, transform_indices = @transform_0, window_bounds = array<i64: 16, 96>}, {pipeline_mode = #tpu.pipeline_mode<synchronous>, transform_indices = @transform_1, window_bounds = array<i64: 96, 96>}, {pipeline_mode = #tpu.pipeline_mode<synchronous>, transform_indices = @transform_2, window_bounds = array<i64: 32, 96>}, {pipeline_mode = #tpu.pipeline_mode<synchronous>, transform_indices = @transform_3, window_bounds = array<i64: 1, 96>}, {pipeline_mode = #tpu.pipeline_mode<synchronous>, transform_indices = @transform_4, window_bounds = array<i64: 1, 32>}, {pipeline_mode = #tpu.pipeline_mode<synchronous>, transform_indices = @transform_5, window_bounds = array<i64: 256, 8>}, {pipeline_mode = #tpu.pipeline_mode<synchronous>, transform_indices = @transform_6, window_bounds = array<i64: 1, 1>}, {pipeline_mode = #tpu.pipeline_mode<synchronous>, transform_indices = @transform_7, window_bounds = array<i64: 2, 8>}]} {
    %c0 = arith.constant 0 : index
    %c0_0 = arith.constant 0 : index
    %0 = vector.load %arg1[%c0, %c0_0] : memref<16x96xf32, #tpu.memory_space<vmem>>, vector<16x96xf32>
    %c0_1 = arith.constant 0 : index
    %c0_2 = arith.constant 0 : index
    %1 = vector.load %arg2[%c0_1, %c0_2] : memref<96x96xf32, #tpu.memory_space<vmem>>, vector<96x96xf32>
    %cst = arith.constant dense<0.000000e+00> : vector<16x96xf32>
    %2 = tpu.matmul %0, %1, %cst {dimension_numbers = #tpu.dot_dimension_numbers<[1], [0], [0], [1], [0, 0, 1, 1], [], []>} : vector<16x96xf32>, vector<96x96xf32>, vector<16x96xf32> -> vector<16x96xf32>
    %c0_3 = arith.constant 0 : index
    %c0_4 = arith.constant 0 : index
    %3 = vector.load %arg4[%c0_3, %c0_4] : memref<1x96xf32, #tpu.memory_space<vmem>>, vector<1x96xf32>
    %4 = vector.broadcast %3 : vector<1x96xf32> to vector<16x96xf32>
    %5 = arith.addf %2, %4 : vector<16x96xf32>
    %c0_5 = arith.constant 0 : index
    %c0_6 = arith.constant 0 : index
    %6 = vector.load %arg3[%c0_5, %c0_6] : memref<32x96xf32, #tpu.memory_space<vmem>>, vector<32x96xf32>
    %c0_7 = arith.constant 0 : index
    %c0_8 = arith.constant 0 : index
    %7 = vector.load %arg5[%c0_7, %c0_8] : memref<1x32xf32, #tpu.memory_space<vmem>>, vector<1x32xf32>
    %cst_9 = arith.constant 0.000000e+00 : f32
    %8 = vector.broadcast %cst_9 : f32 to vector<2x32xf32>
    %9 = vector.extract_strided_slice %5 {offsets = [0, 0], sizes = [2, 96], strides = [1, 1]} : vector<16x96xf32> to vector<2x96xf32>
    %cst_10 = arith.constant dense<0.000000e+00> : vector<2x96xf32>
    %10 = tpu.matmul %8, %6, %cst_10 {dimension_numbers = #tpu.dot_dimension_numbers<[1], [0], [0], [1], [0, 0, 1, 1], [], []>} : vector<2x32xf32>, vector<32x96xf32>, vector<2x96xf32> -> vector<2x96xf32>
    %11 = vector.extract_strided_slice %9 {offsets = [0, 0], sizes = [2, 32], strides = [1, 1]} : vector<2x96xf32> to vector<2x32xf32>
    %12 = vector.extract_strided_slice %10 {offsets = [0, 0], sizes = [2, 32], strides = [1, 1]} : vector<2x96xf32> to vector<2x32xf32>
    %13 = arith.addf %11, %12 : vector<2x32xf32>
    %14 = arith.negf %13 : vector<2x32xf32>
    %15 = math.exp %14 : vector<2x32xf32>
    %cst_11 = arith.constant 1.000000e+00 : f32
    %16 = vector.broadcast %cst_11 : f32 to vector<2x32xf32>
    %17 = arith.addf %16, %15 : vector<2x32xf32>
    %18 = arith.divf %16, %17 : vector<2x32xf32>
    %19 = vector.extract_strided_slice %9 {offsets = [0, 32], sizes = [2, 32], strides = [1, 1]} : vector<2x96xf32> to vector<2x32xf32>
    %20 = vector.extract_strided_slice %10 {offsets = [0, 32], sizes = [2, 32], strides = [1, 1]} : vector<2x96xf32> to vector<2x32xf32>
    %21 = arith.addf %19, %20 : vector<2x32xf32>
    %22 = arith.negf %21 : vector<2x32xf32>
    %23 = math.exp %22 : vector<2x32xf32>
    %cst_12 = arith.constant 1.000000e+00 : f32
    %24 = vector.broadcast %cst_12 : f32 to vector<2x32xf32>
    %25 = arith.addf %24, %23 : vector<2x32xf32>
    %26 = arith.divf %24, %25 : vector<2x32xf32>
    %27 = vector.extract_strided_slice %9 {offsets = [0, 64], sizes = [2, 32], strides = [1, 1]} : vector<2x96xf32> to vector<2x32xf32>
    %28 = vector.extract_strided_slice %10 {offsets = [0, 64], sizes = [2, 32], strides = [1, 1]} : vector<2x96xf32> to vector<2x32xf32>
    %29 = vector.broadcast %7 : vector<1x32xf32> to vector<2x32xf32>
    %30 = arith.addf %28, %29 : vector<2x32xf32>
    %31 = arith.mulf %18, %30 : vector<2x32xf32>
    %32 = arith.addf %27, %31 : vector<2x32xf32>
    %33 = math.tanh %32 : vector<2x32xf32>
    %cst_13 = arith.constant 1.000000e+00 : f32
    %34 = vector.broadcast %cst_13 : f32 to vector<2x32xf32>
    %35 = arith.subf %34, %26 : vector<2x32xf32>
    %36 = arith.mulf %35, %33 : vector<2x32xf32>
    %37 = arith.mulf %26, %8 : vector<2x32xf32>
    %38 = arith.addf %36, %37 : vector<2x32xf32>
    %c0_14 = arith.constant 0 : index
    %c0_15 = arith.constant 0 : index
    %39 = vector.load %arg9[%c0_14, %c0_15] : memref<2x256xf32, #tpu.memory_space<vmem>>, vector<2x32xf32>
    tpu.vector_store %arg9[%c0_14, %c0_15], %38 {strides = array<i32>} : memref<2x256xf32, #tpu.memory_space<vmem>>, vector<2x32xf32>,
    %40 = vector.extract_strided_slice %5 {offsets = [2, 0], sizes = [2, 96], strides = [1, 1]} : vector<16x96xf32> to vector<2x96xf32>
    %cst_16 = arith.constant dense<0.000000e+00> : vector<2x96xf32>
    %41 = tpu.matmul %38, %6, %cst_16 {dimension_numbers = #tpu.dot_dimension_numbers<[1], [0], [0], [1], [0, 0, 1, 1], [], []>} : vector<2x32xf32>, vector<32x96xf32>, vector<2x96xf32> -> vector<2x96xf32>
    %42 = vector.extract_strided_slice %40 {offsets = [0, 0], sizes = [2, 32], strides = [1, 1]} : vector<2x96xf32> to vector<2x32xf32>
    %43 = vector.extract_strided_slice %41 {offsets = [0, 0], sizes = [2, 32], strides = [1, 1]} : vector<2x96xf32> to vector<2x32xf32>
    %44 = arith.addf %42, %43 : vector<2x32xf32>
    %45 = arith.negf %44 : vector<2x32xf32>
    %46 = math.exp %45 : vector<2x32xf32>
    %cst_17 = arith.constant 1.000000e+00 : f32
    %47 = vector.broadcast %cst_17 : f32 to vector<2x32xf32>
    %48 = arith.addf %47, %46 : vector<2x32xf32>
    %49 = arith.divf %47, %48 : vector<2x32xf32>
    %50 = vector.extract_strided_slice %40 {offsets = [0, 32], sizes = [2, 32], strides = [1, 1]} : vector<2x96xf32> to vector<2x32xf32>
    %51 = vector.extract_strided_slice %41 {offsets = [0, 32], sizes = [2, 32], strides = [1, 1]} : vector<2x96xf32> to vector<2x32xf32>
    %52 = arith.addf %50, %51 : vector<2x32xf32>
    %53 = arith.negf %52 : vector<2x32xf32>
    %54 = math.exp %53 : vector<2x32xf32>
    %cst_18 = arith.constant 1.000000e+00 : f32
    %55 = vector.broadcast %cst_18 : f32 to vector<2x32xf32>
    %56 = arith.addf %55, %54 : vector<2x32xf32>
    %57 = arith.divf %55, %56 : vector<2x32xf32>
    %58 = vector.extract_strided_slice %40 {offsets = [0, 64], sizes = [2, 32], strides = [1, 1]} : vector<2x96xf32> to vector<2x32xf32>
    %59 = vector.extract_strided_slice %41 {offsets = [0, 64], sizes = [2, 32], strides = [1, 1]} : vector<2x96xf32> to vector<2x32xf32>
    %60 = vector.broadcast %7 : vector<1x32xf32> to vector<2x32xf32>
    %61 = arith.addf %59, %60 : vector<2x32xf32>
    %62 = arith.mulf %49, %61 : vector<2x32xf32>
    %63 = arith.addf %58, %62 : vector<2x32xf32>
    %64 = math.tanh %63 : vector<2x32xf32>
    %cst_19 = arith.constant 1.000000e+00 : f32
    %65 = vector.broadcast %cst_19 : f32 to vector<2x32xf32>
    %66 = arith.subf %65, %57 : vector<2x32xf32>
    %67 = arith.mulf %66, %64 : vector<2x32xf32>
    %68 = arith.mulf %57, %38 : vector<2x32xf32>
    %69 = arith.addf %67, %68 : vector<2x32xf32>
    %c0_20 = arith.constant 0 : index
    %c32 = arith.constant 32 : index
    %70 = vector.load %arg9[%c0_20, %c32] : memref<2x256xf32, #tpu.memory_space<vmem>>, vector<2x32xf32>
    tpu.vector_store %arg9[%c0_20, %c32], %69 {strides = array<i32>} : memref<2x256xf32, #tpu.memory_space<vmem>>, vector<2x32xf32>,
    %71 = vector.extract_strided_slice %5 {offsets = [4, 0], sizes = [2, 96], strides = [1, 1]} : vector<16x96xf32> to vector<2x96xf32>
    %cst_21 = arith.constant dense<0.000000e+00> : vector<2x96xf32>
    %72 = tpu.matmul %69, %6, %cst_21 {dimension_numbers = #tpu.dot_dimension_numbers<[1], [0], [0], [1], [0, 0, 1, 1], [], []>} : vector<2x32xf32>, vector<32x96xf32>, vector<2x96xf32> -> vector<2x96xf32>
    %73 = vector.extract_strided_slice %71 {offsets = [0, 0], sizes = [2, 32], strides = [1, 1]} : vector<2x96xf32> to vector<2x32xf32>
    %74 = vector.extract_strided_slice %72 {offsets = [0, 0], sizes = [2, 32], strides = [1, 1]} : vector<2x96xf32> to vector<2x32xf32>
    %75 = arith.addf %73, %74 : vector<2x32xf32>
    %76 = arith.negf %75 : vector<2x32xf32>
    %77 = math.exp %76 : vector<2x32xf32>
    %cst_22 = arith.constant 1.000000e+00 : f32
    %78 = vector.broadcast %cst_22 : f32 to vector<2x32xf32>
    %79 = arith.addf %78, %77 : vector<2x32xf32>
    %80 = arith.divf %78, %79 : vector<2x32xf32>
    %81 = vector.extract_strided_slice %71 {offsets = [0, 32], sizes = [2, 32], strides = [1, 1]} : vector<2x96xf32> to vector<2x32xf32>
    %82 = vector.extract_strided_slice %72 {offsets = [0, 32], sizes = [2, 32], strides = [1, 1]} : vector<2x96xf32> to vector<2x32xf32>
    %83 = arith.addf %81, %82 : vector<2x32xf32>
    %84 = arith.negf %83 : vector<2x32xf32>
    %85 = math.exp %84 : vector<2x32xf32>
    %cst_23 = arith.constant 1.000000e+00 : f32
    %86 = vector.broadcast %cst_23 : f32 to vector<2x32xf32>
    %87 = arith.addf %86, %85 : vector<2x32xf32>
    %88 = arith.divf %86, %87 : vector<2x32xf32>
    %89 = vector.extract_strided_slice %71 {offsets = [0, 64], sizes = [2, 32], strides = [1, 1]} : vector<2x96xf32> to vector<2x32xf32>
    %90 = vector.extract_strided_slice %72 {offsets = [0, 64], sizes = [2, 32], strides = [1, 1]} : vector<2x96xf32> to vector<2x32xf32>
    %91 = vector.broadcast %7 : vector<1x32xf32> to vector<2x32xf32>
    %92 = arith.addf %90, %91 : vector<2x32xf32>
    %93 = arith.mulf %80, %92 : vector<2x32xf32>
    %94 = arith.addf %89, %93 : vector<2x32xf32>
    %95 = math.tanh %94 : vector<2x32xf32>
    %cst_24 = arith.constant 1.000000e+00 : f32
    %96 = vector.broadcast %cst_24 : f32 to vector<2x32xf32>
    %97 = arith.subf %96, %88 : vector<2x32xf32>
    %98 = arith.mulf %97, %95 : vector<2x32xf32>
    %99 = arith.mulf %88, %69 : vector<2x32xf32>
    %100 = arith.addf %98, %99 : vector<2x32xf32>
    %c0_25 = arith.constant 0 : index
    %c64 = arith.constant 64 : index
    %101 = vector.load %arg9[%c0_25, %c64] : memref<2x256xf32, #tpu.memory_space<vmem>>, vector<2x32xf32>
    tpu.vector_store %arg9[%c0_25, %c64], %100 {strides = array<i32>} : memref<2x256xf32, #tpu.memory_space<vmem>>, vector<2x32xf32>,
    %102 = vector.extract_strided_slice %5 {offsets = [6, 0], sizes = [2, 96], strides = [1, 1]} : vector<16x96xf32> to vector<2x96xf32>
    %cst_26 = arith.constant dense<0.000000e+00> : vector<2x96xf32>
    %103 = tpu.matmul %100, %6, %cst_26 {dimension_numbers = #tpu.dot_dimension_numbers<[1], [0], [0], [1], [0, 0, 1, 1], [], []>} : vector<2x32xf32>, vector<32x96xf32>, vector<2x96xf32> -> vector<2x96xf32>
    %104 = vector.extract_strided_slice %102 {offsets = [0, 0], sizes = [2, 32], strides = [1, 1]} : vector<2x96xf32> to vector<2x32xf32>
    %105 = vector.extract_strided_slice %103 {offsets = [0, 0], sizes = [2, 32], strides = [1, 1]} : vector<2x96xf32> to vector<2x32xf32>
    %106 = arith.addf %104, %105 : vector<2x32xf32>
    %107 = arith.negf %106 : vector<2x32xf32>
    %108 = math.exp %107 : vector<2x32xf32>
    %cst_27 = arith.constant 1.000000e+00 : f32
    %109 = vector.broadcast %cst_27 : f32 to vector<2x32xf32>
    %110 = arith.addf %109, %108 : vector<2x32xf32>
    %111 = arith.divf %109, %110 : vector<2x32xf32>
    %112 = vector.extract_strided_slice %102 {offsets = [0, 32], sizes = [2, 32], strides = [1, 1]} : vector<2x96xf32> to vector<2x32xf32>
    %113 = vector.extract_strided_slice %103 {offsets = [0, 32], sizes = [2, 32], strides = [1, 1]} : vector<2x96xf32> to vector<2x32xf32>
    %114 = arith.addf %112, %113 : vector<2x32xf32>
    %115 = arith.negf %114 : vector<2x32xf32>
    %116 = math.exp %115 : vector<2x32xf32>
    %cst_28 = arith.constant 1.000000e+00 : f32
    %117 = vector.broadcast %cst_28 : f32 to vector<2x32xf32>
    %118 = arith.addf %117, %116 : vector<2x32xf32>
    %119 = arith.divf %117, %118 : vector<2x32xf32>
    %120 = vector.extract_strided_slice %102 {offsets = [0, 64], sizes = [2, 32], strides = [1, 1]} : vector<2x96xf32> to vector<2x32xf32>
    %121 = vector.extract_strided_slice %103 {offsets = [0, 64], sizes = [2, 32], strides = [1, 1]} : vector<2x96xf32> to vector<2x32xf32>
    %122 = vector.broadcast %7 : vector<1x32xf32> to vector<2x32xf32>
    %123 = arith.addf %121, %122 : vector<2x32xf32>
    %124 = arith.mulf %111, %123 : vector<2x32xf32>
    %125 = arith.addf %120, %124 : vector<2x32xf32>
    %126 = math.tanh %125 : vector<2x32xf32>
    %cst_29 = arith.constant 1.000000e+00 : f32
    %127 = vector.broadcast %cst_29 : f32 to vector<2x32xf32>
    %128 = arith.subf %127, %119 : vector<2x32xf32>
    %129 = arith.mulf %128, %126 : vector<2x32xf32>
    %130 = arith.mulf %119, %100 : vector<2x32xf32>
    %131 = arith.addf %129, %130 : vector<2x32xf32>
    %c0_30 = arith.constant 0 : index
    %c96 = arith.constant 96 : index
    %132 = vector.load %arg9[%c0_30, %c96] : memref<2x256xf32, #tpu.memory_space<vmem>>, vector<2x32xf32>
    tpu.vector_store %arg9[%c0_30, %c96], %131 {strides = array<i32>} : memref<2x256xf32, #tpu.memory_space<vmem>>, vector<2x32xf32>,
    %133 = vector.extract_strided_slice %5 {offsets = [8, 0], sizes = [2, 96], strides = [1, 1]} : vector<16x96xf32> to vector<2x96xf32>
    %cst_31 = arith.constant dense<0.000000e+00> : vector<2x96xf32>
    %134 = tpu.matmul %131, %6, %cst_31 {dimension_numbers = #tpu.dot_dimension_numbers<[1], [0], [0], [1], [0, 0, 1, 1], [], []>} : vector<2x32xf32>, vector<32x96xf32>, vector<2x96xf32> -> vector<2x96xf32>
    %135 = vector.extract_strided_slice %133 {offsets = [0, 0], sizes = [2, 32], strides = [1, 1]} : vector<2x96xf32> to vector<2x32xf32>
    %136 = vector.extract_strided_slice %134 {offsets = [0, 0], sizes = [2, 32], strides = [1, 1]} : vector<2x96xf32> to vector<2x32xf32>
    %137 = arith.addf %135, %136 : vector<2x32xf32>
    %138 = arith.negf %137 : vector<2x32xf32>
    %139 = math.exp %138 : vector<2x32xf32>
    %cst_32 = arith.constant 1.000000e+00 : f32
    %140 = vector.broadcast %cst_32 : f32 to vector<2x32xf32>
    %141 = arith.addf %140, %139 : vector<2x32xf32>
    %142 = arith.divf %140, %141 : vector<2x32xf32>
    %143 = vector.extract_strided_slice %133 {offsets = [0, 32], sizes = [2, 32], strides = [1, 1]} : vector<2x96xf32> to vector<2x32xf32>
    %144 = vector.extract_strided_slice %134 {offsets = [0, 32], sizes = [2, 32], strides = [1, 1]} : vector<2x96xf32> to vector<2x32xf32>
    %145 = arith.addf %143, %144 : vector<2x32xf32>
    %146 = arith.negf %145 : vector<2x32xf32>
    %147 = math.exp %146 : vector<2x32xf32>
    %cst_33 = arith.constant 1.000000e+00 : f32
    %148 = vector.broadcast %cst_33 : f32 to vector<2x32xf32>
    %149 = arith.addf %148, %147 : vector<2x32xf32>
    %150 = arith.divf %148, %149 : vector<2x32xf32>
    %151 = vector.extract_strided_slice %133 {offsets = [0, 64], sizes = [2, 32], strides = [1, 1]} : vector<2x96xf32> to vector<2x32xf32>
    %152 = vector.extract_strided_slice %134 {offsets = [0, 64], sizes = [2, 32], strides = [1, 1]} : vector<2x96xf32> to vector<2x32xf32>
    %153 = vector.broadcast %7 : vector<1x32xf32> to vector<2x32xf32>
    %154 = arith.addf %152, %153 : vector<2x32xf32>
    %155 = arith.mulf %142, %154 : vector<2x32xf32>
    %156 = arith.addf %151, %155 : vector<2x32xf32>
    %157 = math.tanh %156 : vector<2x32xf32>
    %cst_34 = arith.constant 1.000000e+00 : f32
    %158 = vector.broadcast %cst_34 : f32 to vector<2x32xf32>
    %159 = arith.subf %158, %150 : vector<2x32xf32>
    %160 = arith.mulf %159, %157 : vector<2x32xf32>
    %161 = arith.mulf %150, %131 : vector<2x32xf32>
    %162 = arith.addf %160, %161 : vector<2x32xf32>
    %c0_35 = arith.constant 0 : index
    %c128 = arith.constant 128 : index
    %163 = vector.load %arg9[%c0_35, %c128] : memref<2x256xf32, #tpu.memory_space<vmem>>, vector<2x32xf32>
    tpu.vector_store %arg9[%c0_35, %c128], %162 {strides = array<i32>} : memref<2x256xf32, #tpu.memory_space<vmem>>, vector<2x32xf32>,
    %164 = vector.extract_strided_slice %5 {offsets = [10, 0], sizes = [2, 96], strides = [1, 1]} : vector<16x96xf32> to vector<2x96xf32>
    %cst_36 = arith.constant dense<0.000000e+00> : vector<2x96xf32>
    %165 = tpu.matmul %162, %6, %cst_36 {dimension_numbers = #tpu.dot_dimension_numbers<[1], [0], [0], [1], [0, 0, 1, 1], [], []>} : vector<2x32xf32>, vector<32x96xf32>, vector<2x96xf32> -> vector<2x96xf32>
    %166 = vector.extract_strided_slice %164 {offsets = [0, 0], sizes = [2, 32], strides = [1, 1]} : vector<2x96xf32> to vector<2x32xf32>
    %167 = vector.extract_strided_slice %165 {offsets = [0, 0], sizes = [2, 32], strides = [1, 1]} : vector<2x96xf32> to vector<2x32xf32>
    %168 = arith.addf %166, %167 : vector<2x32xf32>
    %169 = arith.negf %168 : vector<2x32xf32>
    %170 = math.exp %169 : vector<2x32xf32>
    %cst_37 = arith.constant 1.000000e+00 : f32
    %171 = vector.broadcast %cst_37 : f32 to vector<2x32xf32>
    %172 = arith.addf %171, %170 : vector<2x32xf32>
    %173 = arith.divf %171, %172 : vector<2x32xf32>
    %174 = vector.extract_strided_slice %164 {offsets = [0, 32], sizes = [2, 32], strides = [1, 1]} : vector<2x96xf32> to vector<2x32xf32>
    %175 = vector.extract_strided_slice %165 {offsets = [0, 32], sizes = [2, 32], strides = [1, 1]} : vector<2x96xf32> to vector<2x32xf32>
    %176 = arith.addf %174, %175 : vector<2x32xf32>
    %177 = arith.negf %176 : vector<2x32xf32>
    %178 = math.exp %177 : vector<2x32xf32>
    %cst_38 = arith.constant 1.000000e+00 : f32
    %179 = vector.broadcast %cst_38 : f32 to vector<2x32xf32>
    %180 = arith.addf %179, %178 : vector<2x32xf32>
    %181 = arith.divf %179, %180 : vector<2x32xf32>
    %182 = vector.extract_strided_slice %164 {offsets = [0, 64], sizes = [2, 32], strides = [1, 1]} : vector<2x96xf32> to vector<2x32xf32>
    %183 = vector.extract_strided_slice %165 {offsets = [0, 64], sizes = [2, 32], strides = [1, 1]} : vector<2x96xf32> to vector<2x32xf32>
    %184 = vector.broadcast %7 : vector<1x32xf32> to vector<2x32xf32>
    %185 = arith.addf %183, %184 : vector<2x32xf32>
    %186 = arith.mulf %173, %185 : vector<2x32xf32>
    %187 = arith.addf %182, %186 : vector<2x32xf32>
    %188 = math.tanh %187 : vector<2x32xf32>
    %cst_39 = arith.constant 1.000000e+00 : f32
    %189 = vector.broadcast %cst_39 : f32 to vector<2x32xf32>
    %190 = arith.subf %189, %181 : vector<2x32xf32>
    %191 = arith.mulf %190, %188 : vector<2x32xf32>
    %192 = arith.mulf %181, %162 : vector<2x32xf32>
    %193 = arith.addf %191, %192 : vector<2x32xf32>
    %c0_40 = arith.constant 0 : index
    %c160 = arith.constant 160 : index
    %194 = vector.load %arg9[%c0_40, %c160] : memref<2x256xf32, #tpu.memory_space<vmem>>, vector<2x32xf32>
    tpu.vector_store %arg9[%c0_40, %c160], %193 {strides = array<i32>} : memref<2x256xf32, #tpu.memory_space<vmem>>, vector<2x32xf32>,
    %195 = vector.extract_strided_slice %5 {offsets = [12, 0], sizes = [2, 96], strides = [1, 1]} : vector<16x96xf32> to vector<2x96xf32>
    %cst_41 = arith.constant dense<0.000000e+00> : vector<2x96xf32>
    %196 = tpu.matmul %193, %6, %cst_41 {dimension_numbers = #tpu.dot_dimension_numbers<[1], [0], [0], [1], [0, 0, 1, 1], [], []>} : vector<2x32xf32>, vector<32x96xf32>, vector<2x96xf32> -> vector<2x96xf32>
    %197 = vector.extract_strided_slice %195 {offsets = [0, 0], sizes = [2, 32], strides = [1, 1]} : vector<2x96xf32> to vector<2x32xf32>
    %198 = vector.extract_strided_slice %196 {offsets = [0, 0], sizes = [2, 32], strides = [1, 1]} : vector<2x96xf32> to vector<2x32xf32>
    %199 = arith.addf %197, %198 : vector<2x32xf32>
    %200 = arith.negf %199 : vector<2x32xf32>
    %201 = math.exp %200 : vector<2x32xf32>
    %cst_42 = arith.constant 1.000000e+00 : f32
    %202 = vector.broadcast %cst_42 : f32 to vector<2x32xf32>
    %203 = arith.addf %202, %201 : vector<2x32xf32>
    %204 = arith.divf %202, %203 : vector<2x32xf32>
    %205 = vector.extract_strided_slice %195 {offsets = [0, 32], sizes = [2, 32], strides = [1, 1]} : vector<2x96xf32> to vector<2x32xf32>
    %206 = vector.extract_strided_slice %196 {offsets = [0, 32], sizes = [2, 32], strides = [1, 1]} : vector<2x96xf32> to vector<2x32xf32>
    %207 = arith.addf %205, %206 : vector<2x32xf32>
    %208 = arith.negf %207 : vector<2x32xf32>
    %209 = math.exp %208 : vector<2x32xf32>
    %cst_43 = arith.constant 1.000000e+00 : f32
    %210 = vector.broadcast %cst_43 : f32 to vector<2x32xf32>
    %211 = arith.addf %210, %209 : vector<2x32xf32>
    %212 = arith.divf %210, %211 : vector<2x32xf32>
    %213 = vector.extract_strided_slice %195 {offsets = [0, 64], sizes = [2, 32], strides = [1, 1]} : vector<2x96xf32> to vector<2x32xf32>
    %214 = vector.extract_strided_slice %196 {offsets = [0, 64], sizes = [2, 32], strides = [1, 1]} : vector<2x96xf32> to vector<2x32xf32>
    %215 = vector.broadcast %7 : vector<1x32xf32> to vector<2x32xf32>
    %216 = arith.addf %214, %215 : vector<2x32xf32>
    %217 = arith.mulf %204, %216 : vector<2x32xf32>
    %218 = arith.addf %213, %217 : vector<2x32xf32>
    %219 = math.tanh %218 : vector<2x32xf32>
    %cst_44 = arith.constant 1.000000e+00 : f32
    %220 = vector.broadcast %cst_44 : f32 to vector<2x32xf32>
    %221 = arith.subf %220, %212 : vector<2x32xf32>
    %222 = arith.mulf %221, %219 : vector<2x32xf32>
    %223 = arith.mulf %212, %193 : vector<2x32xf32>
    %224 = arith.addf %222, %223 : vector<2x32xf32>
    %c0_45 = arith.constant 0 : index
    %c192 = arith.constant 192 : index
    %225 = vector.load %arg9[%c0_45, %c192] : memref<2x256xf32, #tpu.memory_space<vmem>>, vector<2x32xf32>
    tpu.vector_store %arg9[%c0_45, %c192], %224 {strides = array<i32>} : memref<2x256xf32, #tpu.memory_space<vmem>>, vector<2x32xf32>,
    %226 = vector.extract_strided_slice %5 {offsets = [14, 0], sizes = [2, 96], strides = [1, 1]} : vector<16x96xf32> to vector<2x96xf32>
    %cst_46 = arith.constant dense<0.000000e+00> : vector<2x96xf32>
    %227 = tpu.matmul %224, %6, %cst_46 {dimension_numbers = #tpu.dot_dimension_numbers<[1], [0], [0], [1], [0, 0, 1, 1], [], []>} : vector<2x32xf32>, vector<32x96xf32>, vector<2x96xf32> -> vector<2x96xf32>
    %228 = vector.extract_strided_slice %226 {offsets = [0, 0], sizes = [2, 32], strides = [1, 1]} : vector<2x96xf32> to vector<2x32xf32>
    %229 = vector.extract_strided_slice %227 {offsets = [0, 0], sizes = [2, 32], strides = [1, 1]} : vector<2x96xf32> to vector<2x32xf32>
    %230 = arith.addf %228, %229 : vector<2x32xf32>
    %231 = arith.negf %230 : vector<2x32xf32>
    %232 = math.exp %231 : vector<2x32xf32>
    %cst_47 = arith.constant 1.000000e+00 : f32
    %233 = vector.broadcast %cst_47 : f32 to vector<2x32xf32>
    %234 = arith.addf %233, %232 : vector<2x32xf32>
    %235 = arith.divf %233, %234 : vector<2x32xf32>
    %236 = vector.extract_strided_slice %226 {offsets = [0, 32], sizes = [2, 32], strides = [1, 1]} : vector<2x96xf32> to vector<2x32xf32>
    %237 = vector.extract_strided_slice %227 {offsets = [0, 32], sizes = [2, 32], strides = [1, 1]} : vector<2x96xf32> to vector<2x32xf32>
    %238 = arith.addf %236, %237 : vector<2x32xf32>
    %239 = arith.negf %238 : vector<2x32xf32>
    %240 = math.exp %239 : vector<2x32xf32>
    %cst_48 = arith.constant 1.000000e+00 : f32
    %241 = vector.broadcast %cst_48 : f32 to vector<2x32xf32>
    %242 = arith.addf %241, %240 : vector<2x32xf32>
    %243 = arith.divf %241, %242 : vector<2x32xf32>
    %244 = vector.extract_strided_slice %226 {offsets = [0, 64], sizes = [2, 32], strides = [1, 1]} : vector<2x96xf32> to vector<2x32xf32>
    %245 = vector.extract_strided_slice %227 {offsets = [0, 64], sizes = [2, 32], strides = [1, 1]} : vector<2x96xf32> to vector<2x32xf32>
    %246 = vector.broadcast %7 : vector<1x32xf32> to vector<2x32xf32>
    %247 = arith.addf %245, %246 : vector<2x32xf32>
    %248 = arith.mulf %235, %247 : vector<2x32xf32>
    %249 = arith.addf %244, %248 : vector<2x32xf32>
    %250 = math.tanh %249 : vector<2x32xf32>
    %cst_49 = arith.constant 1.000000e+00 : f32
    %251 = vector.broadcast %cst_49 : f32 to vector<2x32xf32>
    %252 = arith.subf %251, %243 : vector<2x32xf32>
    %253 = arith.mulf %252, %250 : vector<2x32xf32>
    %254 = arith.mulf %243, %224 : vector<2x32xf32>
    %255 = arith.addf %253, %254 : vector<2x32xf32>
    %c0_50 = arith.constant 0 : index
    %c224 = arith.constant 224 : index
    %256 = vector.load %arg9[%c0_50, %c224] : memref<2x256xf32, #tpu.memory_space<vmem>>, vector<2x32xf32>
    tpu.vector_store %arg9[%c0_50, %c224], %255 {strides = array<i32>} : memref<2x256xf32, #tpu.memory_space<vmem>>, vector<2x32xf32>,
    %c0_51 = arith.constant 0 : index
    %c0_52 = arith.constant 0 : index
    %257 = vector.load %arg9[%c0_51, %c0_52] : memref<2x256xf32, #tpu.memory_space<vmem>>, vector<2x256xf32>
    %c0_53 = arith.constant 0 : index
    %c0_54 = arith.constant 0 : index
    %258 = vector.load %arg6[%c0_53, %c0_54] : memref<256x8xf32, #tpu.memory_space<vmem>>, vector<256x8xf32>
    %cst_55 = arith.constant dense<0.000000e+00> : vector<2x8xf32>
    %259 = tpu.matmul %257, %258, %cst_55 {dimension_numbers = #tpu.dot_dimension_numbers<[1], [0], [0], [1], [0, 0, 1, 1], [], []>} : vector<2x256xf32>, vector<256x8xf32>, vector<2x8xf32> -> vector<2x8xf32>
    %c0_56 = arith.constant 0 : index
    %c0_57 = arith.constant 0 : index
    %260 = vector.load %arg7[%c0_56, %c0_57] : memref<1x1xf32, #tpu.memory_space<vmem>>, vector<1x1xf32>
    %261 = vector.broadcast %260 : vector<1x1xf32> to vector<2x8xf32>
    %262 = arith.addf %259, %261 : vector<2x8xf32>
    %263 = arith.negf %262 : vector<2x8xf32>
    %264 = math.exp %263 : vector<2x8xf32>
    %cst_58 = arith.constant 1.000000e+00 : f32
    %265 = vector.broadcast %cst_58 : f32 to vector<2x8xf32>
    %266 = arith.addf %265, %264 : vector<2x8xf32>
    %267 = arith.divf %265, %266 : vector<2x8xf32>
    %c0_59 = arith.constant 0 : index
    %c0_60 = arith.constant 0 : index
    %268 = vector.load %arg8[%c0_59, %c0_60] : memref<2x8xf32, #tpu.memory_space<vmem>>, vector<2x8xf32>
    tpu.vector_store %arg8[%c0_59, %c0_60], %267 {strides = array<i32>} : memref<2x8xf32, #tpu.memory_space<vmem>>, vector<2x8xf32>,
    return
  }
  func.func @transform_0(%arg0: i32) -> (i32, i32) {
    %c0_i32 = arith.constant 0 : i32
    %c0_i32_0 = arith.constant 0 : i32
    %c0_i32_1 = arith.constant 0 : i32
    return %c0_i32, %c0_i32_0 : i32, i32
  }
  func.func @transform_1(%arg0: i32) -> (i32, i32) {
    %c0_i32 = arith.constant 0 : i32
    %c0_i32_0 = arith.constant 0 : i32
    %c0_i32_1 = arith.constant 0 : i32
    return %c0_i32, %c0_i32_0 : i32, i32
  }
  func.func @transform_2(%arg0: i32) -> (i32, i32) {
    %c0_i32 = arith.constant 0 : i32
    %c0_i32_0 = arith.constant 0 : i32
    %c0_i32_1 = arith.constant 0 : i32
    return %c0_i32, %c0_i32_0 : i32, i32
  }
  func.func @transform_3(%arg0: i32) -> (i32, i32) {
    %c0_i32 = arith.constant 0 : i32
    %c0_i32_0 = arith.constant 0 : i32
    %c0_i32_1 = arith.constant 0 : i32
    return %c0_i32, %c0_i32_0 : i32, i32
  }
  func.func @transform_4(%arg0: i32) -> (i32, i32) {
    %c0_i32 = arith.constant 0 : i32
    %c0_i32_0 = arith.constant 0 : i32
    %c0_i32_1 = arith.constant 0 : i32
    return %c0_i32, %c0_i32_0 : i32, i32
  }
  func.func @transform_5(%arg0: i32) -> (i32, i32) {
    %c0_i32 = arith.constant 0 : i32
    %c0_i32_0 = arith.constant 0 : i32
    %c0_i32_1 = arith.constant 0 : i32
    return %c0_i32, %c0_i32_0 : i32, i32
  }
  func.func @transform_6(%arg0: i32) -> (i32, i32) {
    %c0_i32 = arith.constant 0 : i32
    %c0_i32_0 = arith.constant 0 : i32
    %c0_i32_1 = arith.constant 0 : i32
    return %c0_i32, %c0_i32_0 : i32, i32
  }
  func.func @transform_7(%arg0: i32) -> (i32, i32) {
    %c0_i32 = arith.constant 0 : i32
    %c0_i32_0 = arith.constant 0 : i32
    %c0_i32_1 = arith.constant 0 : i32
    return %c0_i32, %c0_i32_0 : i32, i32
  }
}

</mosaic_0001>

<bundles_post_ra>
// kernel: tpu_custom_call.1
= control target key start
LH: loop header
LB: loop body
LE: loop exit
PB: predicated region body
PF: predicated region fallthrough
CT: control target
= control target key end

     0   :  { %s1261_s0 = inlined_call_operand.vmem [shape: f32[16,96], index: 0, kind: input, shape index: {}]   ;;  %s1262_s1 = inlined_call_operand.vmem [shape: f32[96,96], index: 1, kind: input, shape index: {}]   ;;  %s1263_s2 = inlined_call_operand.vmem [shape: f32[32,96], index: 2, kind: input, shape index: {}]   ;;  %s1264_s3 = inlined_call_operand.vmem [shape: f32[1,96], index: 3, kind: input, shape index: {}]   ;;  %s1265_s4 = inlined_call_operand.vmem [shape: f32[1,32], index: 4, kind: input, shape index: {}]   ;;  %s1266_s5 = inlined_call_operand.vmem [shape: f32[256,8], index: 5, kind: input, shape index: {}]   ;;  %s1267_s6 = inlined_call_operand.<no memory space> [shape: f32[1,1], index: 6, kind: input, shape index: {}]   ;;  %s1268_s7 = inlined_call_operand.hbm [shape: f32[2,8], index: 7, kind: output, shape index: {}]  }
   0x1   :  { %v12_v0 = vstv %s1267_s6 }
   0x2   :  { %13 = vst [vmem:[#allocation3] sm:$0x1] %v12_v0 }
   0x3   :  { %v42_v1 = vld [vmem:[%s1262_s1 + $0x58] sm:$0xff]  ;;  %v41_v3 = vld [vmem:[%s1262_s1 + $0x50] sm:$0xff]  ;;  %v40_v5 = vld [vmem:[%s1262_s1 + $0x48] sm:$0xff]  ;;  %s924_s22 = smov 64  }
   0x4   :  { %v979_v2 = vld [vmem:[%s1263_s2 + $0x18] sm:$0xff]  ;;  %58 = vmatpush.msra.mxu0 %v42_v1  ;;  %v988_v4 = vld [vmem:[%s1263_s2 + $0x10] sm:$0xff]  ;;  %v996_v6 = vld [vmem:[%s1263_s2 + $0x8] sm:$0xff] }
   0x5   :  { %98 = vmatpush.msra.mxu1 %v979_v2  ;;  %171 = vmatpush.msra.mxu2 %v979_v2  ;;  %v39_v7 = vld [vmem:[%s1262_s1 + $0x40] sm:$0xff]  ;;  %v38_v10 = vld [vmem:[%s1262_s1 + $0x38] sm:$0xff] }
   0x6   :  { %249 = vmatpush.msra.mxu3 %v979_v2  ;;  %59 = vmatpush.msra.mxu0 %v41_v3  ;;  %v1007_v8 = vld [vmem:[%s1263_s2] sm:$0xff] }
   0x7   :  { %99 = vmatpush.msra.mxu1 %v988_v4  ;;  %v843_v9 = vld [vmem:[%s1265_s4] ss:$0 sm:$0xff]  ;;  %172 = vmatpush.msra.mxu2 %v988_v4 }
   0x8   :  { %250 = vmatpush.msra.mxu3 %v988_v4  ;;  %60 = vmatpush.msra.mxu0 %v40_v5 }
   0x9   :  { %100 = vmatpush.msra.mxu1 %v996_v6  ;;  %128 = vrot.lane.b32.xlu0 %v843_v9, %s924_s22 }
   0xa   :  { %173 = vmatpush.msra.mxu2 %v996_v6  ;;  %61 = vmatpush.msra.mxu0 %v39_v7 }
   0xb   :  { %101 = vmatpush.msra.mxu1 %v1007_v8 }
   0xc   :  { %14 = vsyncpa [#allocation5], 0  ;;  %v925_v11 = vmov 0.0   ;;  %v37_v12 = vld [vmem:[%s1262_s1 + $0x30] sm:$0xff]  ;;  %174 = vmatpush.msra.mxu2 %v1007_v8  ;;  %62 = vmatpush.msra.mxu0 %v38_v10  ;;  %v36_v13 = vld [vmem:[%s1262_s1 + $0x28] sm:$0xff]  ;;  %vm47_vm0 = vcmask 785408  }
   0xd   :  { %102 = vmatmul.f32.vlgmr.msra.gmra.mxu1 %v925_v11  ;;  %251 = vmatpush.msra.mxu3 %v996_v6  ;;  %v35_v14 = vld [vmem:[%s1262_s1 + $0x20] sm:$0xff]  ;;  %v34_v15 = vld [vmem:[%s1262_s1 + $0x18] sm:$0xff]  ;;  %v33_v16 = vld [vmem:[%s1262_s1 + $0x10] sm:$0xff]  ;;  %vm155_vm5 = vcmask 254976   ;;  %vm82_vm6 = vcmask 261120   ;;  %vm230_vm11 = vcmask 517376  }
   0xe   :  { %329 = vmatpush.msrb.mxu1 %v979_v2  ;;  %409 = vmatpush.msrb.mxu2 %v979_v2  ;;  %v32_v17 = vld [vmem:[%s1262_s1 + $0x8] sm:$0xff]  ;;  %v31_v18 = vld [vmem:[%s1262_s1] sm:$0xff]  ;;  %s809_s25 = sshll.u32 %s1268_s7, 4  ;;  %s810_s25 = int_to_ptr.hbm [resolvable:$true] %s809_s25 }
   0xf   :  { %63 = vmatpush.msra.mxu0 %v37_v12  ;;  %252 = vmatpush.msra.mxu3 %v1007_v8  ;;  %v29_v19 = vld [vmem:[%s1261_s0] sm:$0xff] }
  0x10   :  { %330 = vmatpush.msrb.mxu1 %v988_v4  ;;  %410 = vmatpush.msrb.mxu2 %v988_v4  ;;  %v1072_v23 = vld [vmem:[%s1264_s3] ss:$0 sm:$0xff]  ;;  %s926_s3 = smov 96  }
  0x11   :  { %64 = vmatpush.msra.mxu0 %v36_v13  ;;  %477 = vmatpush.msrb.mxu3 %v979_v2 }
  0x12   :  { %331 = vmatpush.msrb.mxu1 %v996_v6  ;;  %411 = vmatpush.msrb.mxu2 %v996_v6 }
  0x13   :  { %65 = vmatpush.msra.mxu0 %v35_v14  ;;  %478 = vmatpush.msrb.mxu3 %v988_v4 }
  0x14   :  { %332 = vmatpush.msrb.mxu1 %v1007_v8  ;;  %412 = vmatpush.msrb.mxu2 %v1007_v8 }
  0x15   :  { %66 = vmatpush.msra.mxu0 %v34_v15  ;;  %479 = vmatpush.msrb.mxu3 %v996_v6 }
  0x16   :  { %554 = vmatpush.msra.mxu1 %v979_v2 }
  0x17   :  { %67 = vmatpush.msra.mxu0 %v33_v16  ;;  %480 = vmatpush.msrb.mxu3 %v1007_v8 }
  0x18   :  { %555 = vmatpush.msra.mxu1 %v988_v4 }
  0x19   :  { %68 = vmatpush.msra.mxu0 %v32_v17 }
  0x1a   :  { %556 = vmatpush.msra.mxu1 %v996_v6 }
  0x1b   :  { %69 = vmatpush.msra.mxu0 %v31_v18 }
  0x1c   :  { %818 = vmatmul.msk.f32.vlgmr.msra.gmra.mxu0 %vm47_vm0, %v29_v19  ;;  %557 = vmatpush.msra.mxu1 %v1007_v8 }
  0x7b   :  { %v1065_v20 = vpop.permute.xlu0 %128 }
  0x8a   :  { %v103_v21 = vpop.f32.mrf.mxu1 }
  0x8b   :  { %v131_v22 = vadd.f32 %v1065_v20, %v103_v21 }
  0x8d   :  { %133 = vrot.lane.b32.xlu0 %v131_v22, %s924_s22 }
  0x99   :  { %v71_v24 = vpop.f32.mrf.mxu0 }
  0x9a   :  { %v1075_v25 = vadd.f32 %v1072_v23, %v71_v24 }
  0x9c   :  { %v106_v26 = vadd.f32 %v103_v21, %v1075_v25 }
  0x9e   :  { %v820_v27 = vmul.f32 -1.442695, %v106_v26 }
  0xa0   :  { %846 = vpow2.f32 %v820_v27 }
  0xa6   :  { %v847_v28 = vpop.eup %846 }
  0xa7   :  { %v110_v29 = vadd.f32 1.0, %v847_v28 }
  0xa9   :  { %848 = vrcp.f32 %v110_v29  ;;  %v122_v35 = vand.u32 2147483648, %v110_v29  ;;  %vm116_vm2 = vweird.f32 %v110_v29  ;;  %v120_v36 = vand.u32 2147483647, %v110_v29 }
  0xab   :  { %v123_v38 = vor.u32 1.1754944e-38, %v122_v35  ;;  %vm121_vm4 = vcmp.eq.f32.partialorder %v120_v36, 8.507059e+37 }
  0xaf   :  { %v849_v30 = vpop.eup %848 }
  0xb0   :  { %v112_v31 = vmul.f32 %v849_v30, %v110_v29  ;;  %vm117_vm1 = vweird.f32 %v849_v30 }
  0xb1   :  { %vm118_vm3 = vmor %vm116_vm2, %vm117_vm1 }
  0xb2   :  { %v113_v32 = vsub.f32 1.0, %v112_v31 }
  0xb4   :  { %v114_v33 = vmul.f32 %v849_v30, %v113_v32 }
  0xb6   :  { %v115_v34 = vadd.f32 %v849_v30, %v114_v33 }
  0xb8   :  { %v119_v37 = vsel %vm118_vm3, %v849_v30, %v115_v34 }
  0xb9   :  { %v124_v40 = vsel %vm121_vm4, %v123_v38, %v119_v37 }
  0xba   :  { %v143_v45 = vsub.f32 1.0, %v124_v40  ;;  %v149_v48 = vmul.f32 0.0, %v124_v40 }
  0xff   :  { %v134_v39 = vpop.permute.xlu0 %133 }
 0x100   :  { %v136_v41 = vmul.f32 %v134_v39, %v124_v40 }
 0x102   :  { %138 = vrot.lane.b32.xlu1 %v136_v41, %s924_s22 }
 0x174   :  { %v139_v42 = vpop.permute.xlu1 %138 }
 0x175   :  { %v141_v43 = vadd.f32 %v139_v42, %v1075_v25 }
 0x177   :  { %850 = vtanh.f32 %v141_v43 }
 0x17d   :  { %v851_v44 = vpop.eup %850 }
 0x17e   :  { %145 = vrot.lane.b32.xlu1 %v851_v44, %s926_s3 }
 0x1f0   :  { %v146_v46 = vpop.permute.xlu1 %145 }
 0x1f1   :  { %v148_v47 = vmul.f32 %v146_v46, %v143_v45 }
 0x1f3   :  { %v150_v49 = vadd.f32 %v149_v48, %v148_v47 }
 0x1f5   :  { %152 = vrot.lane.b32.xlu2 %v150_v49, %s926_s3  ;;  %v221_v3 = vrot.slane %v150_v49, 6 }
 0x24f   :  { %v153_v50 = vpop.permute.xlu2 %152 }
 0x250   :  { %156 = vst.msk [vmem:[#allocation2] sm:$0x3] %vm155_vm5, %v153_v50  ;;  %821 = vmatmul.msk.f32.vlgmr.msra.gmra.mxu2 %vm82_vm6, %v153_v50 }
 0x251   :  { %633 = vmatpush.msra.mxu2 %v979_v2 }
 0x253   :  { %634 = vmatpush.msra.mxu2 %v988_v4 }
 0x255   :  { %635 = vmatpush.msra.mxu2 %v996_v6 }
 0x257   :  { %636 = vmatpush.msra.mxu2 %v1007_v8 }
 0x2d3   :  { %v176_v51 = vpop.f32.mrf.mxu2 }
 0x2d4   :  { %v180_v52 = vrot.slane %v176_v51, 6  ;;  %v202_v53 = vadd.f32 %v176_v51, %v1065_v20 }
 0x2d6   :  { %v182_v54 = vadd.f32 %v180_v52, %v1075_v25  ;;  %v204_v55 = vrot.slane %v202_v53, 6 }
 0x2d8   :  { %v822_v56 = vmul.f32 -1.442695, %v182_v54  ;;  %205 = vrot.lane.b32.xlu2 %v204_v55, %s924_s22 }
 0x2da   :  { %852 = vpow2.f32 %v822_v56 }
 0x2e0   :  { %v853_v57 = vpop.eup %852 }
 0x2e1   :  { %v186_v58 = vadd.f32 1.0, %v853_v57 }
 0x2e3   :  { %854 = vrcp.f32 %v186_v58  ;;  %v198_v62 = vand.u32 2147483648, %v186_v58  ;;  %v196_v0 = vand.u32 2147483647, %v186_v58  ;;  %vm192_vm8 = vweird.f32 %v186_v58 }
 0x2e5   :  { %v199_v2 = vor.u32 1.1754944e-38, %v198_v62  ;;  %vm197_vm10 = vcmp.eq.f32.partialorder %v196_v0, 8.507059e+37 }
 0x2e9   :  { %v855_v59 = vpop.eup %854 }
 0x2ea   :  { %v188_v60 = vmul.f32 %v855_v59, %v186_v58  ;;  %vm193_vm7 = vweird.f32 %v855_v59 }
 0x2eb   :  { %vm194_vm9 = vmor %vm192_vm8, %vm193_vm7 }
 0x2ec   :  { %v189_v61 = vsub.f32 1.0, %v188_v60 }
 0x2ee   :  { %v190_v63 = vmul.f32 %v855_v59, %v189_v61 }
 0x2f0   :  { %v191_v1 = vadd.f32 %v855_v59, %v190_v63 }
 0x2f2   :  { %v195_v4 = vsel %vm194_vm9, %v855_v59, %v191_v1 }
 0x2f3   :  { %v200_v5 = vsel %vm197_vm10, %v199_v2, %v195_v4 }
 0x2f4   :  { %v223_v6 = vmul.f32 %v221_v3, %v200_v5  ;;  %v215_v12 = vsub.f32 1.0, %v200_v5 }
 0x332   :  { %v206_v7 = vpop.permute.xlu2 %205 }
 0x333   :  { %v208_v8 = vmul.f32 %v206_v7, %v200_v5 }
 0x335   :  { %210 = vrot.lane.b32.xlu0 %v208_v8, %s924_s22 }
 0x3a7   :  { %v211_v9 = vpop.permute.xlu0 %210 }
 0x3a8   :  { %v213_v10 = vadd.f32 %v211_v9, %v1075_v25 }
 0x3aa   :  { %856 = vtanh.f32 %v213_v10 }
 0x3b0   :  { %v857_v11 = vpop.eup %856 }
 0x3b1   :  { %217 = vrot.lane.b32.xlu1 %v857_v11, %s926_s3 }
 0x423   :  { %v218_v13 = vpop.permute.xlu1 %217 }
 0x424   :  { %v220_v14 = vmul.f32 %v218_v13, %v215_v12 }
 0x426   :  { %v224_v15 = vadd.f32 %v223_v6, %v220_v14 }
 0x428   :  { %226 = vst.sshfl [vmem:[#allocation1] sm:$0xff pattern:$0x73625140] %v224_v15  ;;  %v232_v16 = vrot.slane %v224_v15, 2  ;;  %v299_v46 = vrot.slane %v224_v15, 6 }
 0x42a   :  { %233 = vrot.lane.b32.xlu2 %v232_v16, %s926_s3 }
 0x42f   :  { %v228_v17 = vld [vmem:[#allocation1 + $0x1] ss:$4 sm:$0xff] }
 0x430   :  { %231 = vst.msk [vmem:[#allocation2] sm:$0x3] %vm230_vm11, %v228_v17 }
 0x484   :  { %v234_v18 = vpop.permute.xlu2 %233 }
 0x485   :  { %823 = vmatmul.msk.f32.vlgmr.msra.gmra.mxu3 %vm82_vm6, %v234_v18 }
 0x508   :  { %v254_v19 = vpop.f32.mrf.mxu3 }
 0x509   :  { %v280_v21 = vadd.f32 %v254_v19, %v1065_v20  ;;  %v258_v24 = vrot.slane %v254_v19, 4 }
 0x50b   :  { %v282_v22 = vrot.slane %v280_v21, 4  ;;  %v260_v26 = vadd.f32 %v258_v24, %v1075_v25 }
 0x50d   :  { %283 = vrot.lane.b32.xlu0 %v282_v22, %s924_s22  ;;  %v824_v27 = vmul.f32 -1.442695, %v260_v26 }
 0x50f   :  { %858 = vpow2.f32 %v824_v27 }
 0x515   :  { %v859_v28 = vpop.eup %858 }
 0x516   :  { %v264_v29 = vadd.f32 1.0, %v859_v28 }
 0x518   :  { %860 = vrcp.f32 %v264_v29  ;;  %v276_v35 = vand.u32 2147483648, %v264_v29  ;;  %vm270_vm13 = vweird.f32 %v264_v29  ;;  %v274_v36 = vand.u32 2147483647, %v264_v29 }
 0x51a   :  { %v277_v38 = vor.u32 1.1754944e-38, %v276_v35  ;;  %vm275_vm15 = vcmp.eq.f32.partialorder %v274_v36, 8.507059e+37 }
 0x51e   :  { %v861_v30 = vpop.eup %860 }
 0x51f   :  { %v266_v31 = vmul.f32 %v861_v30, %v264_v29  ;;  %vm271_vm12 = vweird.f32 %v861_v30 }
 0x520   :  { %vm272_vm14 = vmor %vm270_vm13, %vm271_vm12 }
 0x521   :  { %v267_v32 = vsub.f32 1.0, %v266_v31 }
 0x523   :  { %v268_v33 = vmul.f32 %v861_v30, %v267_v32 }
 0x525   :  { %v269_v34 = vadd.f32 %v861_v30, %v268_v33 }
 0x527   :  { %v273_v37 = vsel %vm272_vm14, %v861_v30, %v269_v34 }
 0x528   :  { %v278_v40 = vsel %vm275_vm15, %v277_v38, %v273_v37 }
 0x529   :  { %v293_v45 = vsub.f32 1.0, %v278_v40  ;;  %v301_v48 = vmul.f32 %v299_v46, %v278_v40 }
 0x57f   :  { %v284_v39 = vpop.permute.xlu0 %283 }
 0x580   :  { %v286_v41 = vmul.f32 %v284_v39, %v278_v40 }
 0x582   :  { %288 = vrot.lane.b32.xlu1 %v286_v41, %s924_s22 }
 0x5f4   :  { %v289_v42 = vpop.permute.xlu1 %288 }
 0x5f5   :  { %v291_v43 = vadd.f32 %v289_v42, %v1075_v25 }
 0x5f7   :  { %862 = vtanh.f32 %v291_v43 }
 0x5fd   :  { %v863_v44 = vpop.eup %862 }
 0x5fe   :  { %295 = vrot.lane.b32.xlu2 %v863_v44, %s926_s3 }
 0x658   :  { %v296_v47 = vpop.permute.xlu2 %295 }
 0x659   :  { %v298_v49 = vmul.f32 %v296_v47, %v293_v45 }
 0x65b   :  { %v302_v50 = vadd.f32 %v301_v48, %v298_v49 }
 0x65d   :  { %304 = vst.sshfl [vmem:[#allocation1] sm:$0xff pattern:$0x73625140] %v302_v50  ;;  %v312_v51 = vrot.slane %v302_v50, 4  ;;  %v379_v13 = vrot.slane %v302_v50, 6 }
 0x65f   :  { %313 = vrot.lane.b32.xlu0 %v312_v51, %s926_s3 }
 0x664   :  { %v1111_v18 = vld [vmem:[#allocation1 + $0x2] ss:$4 sm:$0xff] }
 0x6d1   :  { %v314_v52 = vpop.permute.xlu0 %313 }
 0x6d2   :  { %825 = vmatmul.msk.f32.vlgmr.msrb.gmra.mxu1 %vm82_vm6, %v314_v52 }
 0x74f   :  { %v334_v53 = vpop.f32.mrf.mxu1 }
 0x750   :  { %v360_v54 = vadd.f32 %v334_v53, %v1065_v20  ;;  %v338_v56 = vrot.slane %v334_v53, 2 }
 0x752   :  { %v362_v55 = vrot.slane %v360_v54, 2  ;;  %v340_v57 = vadd.f32 %v338_v56, %v1075_v25 }
 0x754   :  { %363 = vrot.lane.b32.xlu1 %v362_v55, %s924_s22  ;;  %v826_v58 = vmul.f32 -1.442695, %v340_v57 }
 0x756   :  { %864 = vpow2.f32 %v826_v58 }
 0x75c   :  { %v865_v59 = vpop.eup %864 }
 0x75d   :  { %v344_v60 = vadd.f32 1.0, %v865_v59 }
 0x75f   :  { %866 = vrcp.f32 %v344_v60  ;;  %v356_v2 = vand.u32 2147483648, %v344_v60  ;;  %vm350_vm2 = vweird.f32 %v344_v60  ;;  %v354_v3 = vand.u32 2147483647, %v344_v60 }
 0x761   :  { %v357_v5 = vor.u32 1.1754944e-38, %v356_v2  ;;  %vm355_vm4 = vcmp.eq.f32.partialorder %v354_v3, 8.507059e+37 }
 0x765   :  { %v867_v61 = vpop.eup %866 }
 0x766   :  { %v346_v62 = vmul.f32 %v867_v61, %v344_v60  ;;  %vm351_vm1 = vweird.f32 %v867_v61 }
 0x767   :  { %vm352_vm3 = vmor %vm350_vm2, %vm351_vm1 }
 0x768   :  { %v347_v63 = vsub.f32 1.0, %v346_v62 }
 0x76a   :  { %v348_v0 = vmul.f32 %v867_v61, %v347_v63 }
 0x76c   :  { %v349_v1 = vadd.f32 %v867_v61, %v348_v0 }
 0x76e   :  { %v353_v4 = vsel %vm352_vm3, %v867_v61, %v349_v1 }
 0x76f   :  { %v358_v7 = vsel %vm355_vm4, %v357_v5, %v353_v4 }
 0x770   :  { %v373_v12 = vsub.f32 1.0, %v358_v7  ;;  %v381_v15 = vmul.f32 %v379_v13, %v358_v7 }
 0x7c6   :  { %v364_v6 = vpop.permute.xlu1 %363 }
 0x7c7   :  { %v366_v8 = vmul.f32 %v364_v6, %v358_v7 }
 0x7c9   :  { %368 = vrot.lane.b32.xlu2 %v366_v8, %s924_s22 }
 0x823   :  { %v369_v9 = vpop.permute.xlu2 %368 }
 0x824   :  { %v371_v10 = vadd.f32 %v369_v9, %v1075_v25  ;;  %v30_v25 = vld [vmem:[%s1261_s0 + $0x8] sm:$0xff]  ;;  %s927_s0 = smov 32  }
 0x825   :  { %819 = vmatmul.msk.f32.gmra.mxu0 %vm47_vm0, %v30_v25 }
 0x826   :  { %868 = vtanh.f32 %v371_v10 }
 0x82c   :  { %v869_v11 = vpop.eup %868 }
 0x82d   :  { %375 = vrot.lane.b32.xlu0 %v869_v11, %s926_s3 }
 0x89f   :  { %v376_v14 = vpop.permute.xlu0 %375 }
 0x8a0   :  { %v378_v16 = vmul.f32 %v376_v14, %v373_v12 }
 0x8a2   :  { %v382_v17 = vadd.f32 %v381_v15, %v378_v16  ;;  %v74_v26 = vpop.f32.mrf.mxu0 }
 0x8a3   :  { %v1122_v27 = vadd.f32 %v1072_v23, %v74_v26 }
 0x8a4   :  { %v392_v19 = vrot.slane %v382_v17, 6  ;;  %384 = vst.sshfl [vmem:[#allocation1] sm:$0xff pattern:$0x73625140] %v382_v17 }
 0x8a6   :  { %393 = vrot.lane.b32.xlu1 %v392_v19, %s926_s3 }
 0x8ab   :  { %v1137_v17 = vld [vmem:[#allocation1 + $0x3] ss:$4 sm:$0xff] }
 0x918   :  { %v394_v21 = vpop.permute.xlu1 %393 }
 0x919   :  { %827 = vmatmul.msk.f32.vlgmr.msrb.gmra.mxu2 %vm82_vm6, %v394_v21 }
 0x99c   :  { %v414_v22 = vpop.f32.mrf.mxu2 }
 0x99d   :  { %v437_v24 = vadd.f32 %v414_v22, %v1065_v20  ;;  %v417_v28 = vadd.f32 %v414_v22, %v1122_v27 }
 0x99f   :  { %439 = vrot.lane.b32.xlu2 %v437_v24, %s924_s22  ;;  %v828_v29 = vmul.f32 -1.442695, %v417_v28 }
 0x9a1   :  { %870 = vpow2.f32 %v828_v29 }
 0x9a7   :  { %v871_v30 = vpop.eup %870 }
 0x9a8   :  { %v421_v31 = vadd.f32 1.0, %v871_v30 }
 0x9aa   :  { %872 = vrcp.f32 %v421_v31  ;;  %v433_v37 = vand.u32 2147483648, %v421_v31  ;;  %vm427_vm7 = vweird.f32 %v421_v31  ;;  %v431_v38 = vand.u32 2147483647, %v421_v31 }
 0x9ac   :  { %v434_v23 = vor.u32 1.1754944e-38, %v433_v37  ;;  %vm432_vm9 = vcmp.eq.f32.partialorder %v431_v38, 8.507059e+37 }
 0x9b0   :  { %v873_v32 = vpop.eup %872 }
 0x9b1   :  { %v423_v33 = vmul.f32 %v873_v32, %v421_v31  ;;  %vm428_vm0 = vweird.f32 %v873_v32 }
 0x9b2   :  { %vm429_vm8 = vmor %vm427_vm7, %vm428_vm0  ;;  %vm310_vm0 = vcmask 779776   ;;  %vm390_vm7 = vcmask 1042176  }
 0x9b3   :  { %v424_v34 = vsub.f32 1.0, %v423_v33 }
 0x9b5   :  { %v425_v35 = vmul.f32 %v873_v32, %v424_v34 }
 0x9b7   :  { %v426_v36 = vadd.f32 %v873_v32, %v425_v35 }
 0x9b9   :  { %v430_v39 = vsel %vm429_vm8, %v873_v32, %v426_v36 }
 0x9ba   :  { %v435_v41 = vsel %vm432_vm9, %v434_v23, %v430_v39 }
 0x9bb   :  { %v449_v46 = vsub.f32 1.0, %v435_v41  ;;  %v456_v48 = vmul.f32 %v435_v41, %v392_v19 }
 0x9f9   :  { %v440_v40 = vpop.permute.xlu2 %439 }
 0x9fa   :  { %v442_v42 = vmul.f32 %v440_v40, %v435_v41 }
 0x9fc   :  { %444 = vrot.lane.b32.xlu0 %v442_v42, %s924_s22 }
 0xa6e   :  { %v445_v43 = vpop.permute.xlu0 %444 }
 0xa6f   :  { %v447_v44 = vadd.f32 %v445_v43, %v1122_v27 }
 0xa71   :  { %874 = vtanh.f32 %v447_v44 }
 0xa77   :  { %v875_v45 = vpop.eup %874 }
 0xa78   :  { %451 = vrot.lane.b32.xlu1 %v875_v45, %s926_s3 }
 0xaea   :  { %v452_v47 = vpop.permute.xlu1 %451 }
 0xaeb   :  { %v454_v49 = vmul.f32 %v452_v47, %v449_v46 }
 0xaed   :  { %v457_v50 = vadd.f32 %v456_v48, %v454_v49 }
 0xaef   :  { %459 = vrot.lane.b32.xlu2 %v457_v50, %s926_s3  ;;  %v527_v11 = vrot.slane %v457_v50, 6 }
 0xb49   :  { %v460_v51 = vpop.permute.xlu2 %459 }
 0xb4a   :  { %462 = vst.msk [vmem:[#allocation2 + $0x2] sm:$0x3] %vm155_vm5, %v460_v51  ;;  %829 = vmatmul.msk.f32.vlgmr.msrb.gmra.mxu3 %vm82_vm6, %v460_v51 }
 0xbcd   :  { %v482_v52 = vpop.f32.mrf.mxu3 }
 0xbce   :  { %v508_v53 = vadd.f32 %v482_v52, %v1065_v20  ;;  %v486_v55 = vrot.slane %v482_v52, 6 }
 0xbd0   :  { %v510_v54 = vrot.slane %v508_v53, 6  ;;  %v488_v56 = vadd.f32 %v486_v55, %v1122_v27 }
 0xbd2   :  { %511 = vrot.lane.b32.xlu0 %v510_v54, %s924_s22  ;;  %v830_v57 = vmul.f32 -1.442695, %v488_v56 }
 0xbd4   :  { %876 = vpow2.f32 %v830_v57 }
 0xbda   :  { %v877_v58 = vpop.eup %876 }
 0xbdb   :  { %v492_v59 = vadd.f32 1.0, %v877_v58 }
 0xbdd   :  { %878 = vrcp.f32 %v492_v59  ;;  %v504_v1 = vand.u32 2147483648, %v492_v59  ;;  %vm498_vm10 = vweird.f32 %v492_v59  ;;  %v502_v2 = vand.u32 2147483647, %v492_v59 }
 0xbdf   :  { %v505_v4 = vor.u32 1.1754944e-38, %v504_v1  ;;  %vm503_vm13 = vcmp.eq.f32.partialorder %v502_v2, 8.507059e+37 }
 0xbe3   :  { %v879_v60 = vpop.eup %878 }
 0xbe4   :  { %v494_v61 = vmul.f32 %v879_v60, %v492_v59  ;;  %vm499_vm5 = vweird.f32 %v879_v60 }
 0xbe5   :  { %vm500_vm12 = vmor %vm498_vm10, %vm499_vm5  ;;  %vm800_vm10 = vcmask 58368  }
 0xbe6   :  { %v495_v62 = vsub.f32 1.0, %v494_v61 }
 0xbe8   :  { %v496_v63 = vmul.f32 %v879_v60, %v495_v62 }
 0xbea   :  { %v497_v0 = vadd.f32 %v879_v60, %v496_v63 }
 0xbec   :  { %v501_v3 = vsel %vm500_vm12, %v879_v60, %v497_v0 }
 0xbed   :  { %v506_v6 = vsel %vm503_vm13, %v505_v4, %v501_v3 }
 0xbee   :  { %v521_v12 = vsub.f32 1.0, %v506_v6  ;;  %v529_v15 = vmul.f32 %v527_v11, %v506_v6 }
 0xc44   :  { %v512_v5 = vpop.permute.xlu0 %511 }
 0xc45   :  { %v514_v7 = vmul.f32 %v512_v5, %v506_v6 }
 0xc47   :  { %516 = vrot.lane.b32.xlu1 %v514_v7, %s924_s22 }
 0xcb9   :  { %v517_v8 = vpop.permute.xlu1 %516 }
 0xcba   :  { %v519_v9 = vadd.f32 %v517_v8, %v1122_v27 }
 0xcbc   :  { %880 = vtanh.f32 %v519_v9 }
 0xcc2   :  { %v881_v10 = vpop.eup %880 }
 0xcc3   :  { %523 = vrot.lane.b32.xlu2 %v881_v10, %s926_s3 }
 0xd1d   :  { %v524_v13 = vpop.permute.xlu2 %523 }
 0xd1e   :  { %v526_v14 = vmul.f32 %v524_v13, %v521_v12 }
 0xd20   :  { %v530_v16 = vadd.f32 %v529_v15, %v526_v14 }
 0xd22   :  { %v537_v19 = vrot.slane %v530_v16, 2  ;;  %532 = vst.sshfl [vmem:[#allocation1] sm:$0xff pattern:$0x73625140] %v530_v16  ;;  %v604_v48 = vrot.slane %v530_v16, 6 }
 0xd24   :  { %538 = vrot.lane.b32.xlu0 %v537_v19, %s926_s3  ;;  %v711_v19 = vld [vmem:[%s1266_s5 + $0x78] sm:$0xff] }
 0xd25   :  { %741 = vmatpush.msra.mxu3 %v711_v19 }
 0xd29   :  { %v534_v25 = vld [vmem:[#allocation1 + $0x1] ss:$4 sm:$0xff] }
 0xd2a   :  { %536 = vst.msk [vmem:[#allocation2 + $0x2] sm:$0x3] %vm230_vm11, %v534_v25  ;;  %v727_v25 = vld [vmem:[%s1266_s5 + $0xf8] sm:$0xff] }
 0xd2b   :  { %761 = vmatpush.msrb.mxu0 %v727_v25 }
 0xd96   :  { %v539_v21 = vpop.permute.xlu0 %538 }
 0xd97   :  { %831 = vmatmul.msk.f32.vlgmr.msra.gmra.mxu1 %vm82_vm6, %v539_v21  ;;  %v726_v21 = vld [vmem:[%s1266_s5 + $0xf0] sm:$0xff] }
 0xd98   :  { %762 = vmatpush.msrb.mxu0 %v726_v21 }
 0xe14   :  { %v559_v22 = vpop.f32.mrf.mxu1 }
 0xe15   :  { %v585_v24 = vadd.f32 %v559_v22, %v1065_v20  ;;  %v563_v28 = vrot.slane %v559_v22, 4  ;;  %v725_v22 = vld [vmem:[%s1266_s5 + $0xe8] sm:$0xff] }
 0xe16   :  { %763 = vmatpush.msrb.mxu0 %v725_v22 }
 0xe17   :  { %v587_v26 = vrot.slane %v585_v24, 4  ;;  %v565_v29 = vadd.f32 %v563_v28, %v1122_v27  ;;  %v708_v24 = vld [vmem:[%s1266_s5 + $0x60] sm:$0xff]  ;;  %v707_v28 = vld [vmem:[%s1266_s5 + $0x58] sm:$0xff] }
 0xe19   :  { %588 = vrot.lane.b32.xlu1 %v587_v26, %s924_s22  ;;  %v832_v30 = vmul.f32 -1.442695, %v565_v29  ;;  %v724_v26 = vld [vmem:[%s1266_s5 + $0xe0] sm:$0xff]  ;;  %v723_v29 = vld [vmem:[%s1266_s5 + $0xd8] sm:$0xff] }
 0xe1a   :  { %764 = vmatpush.msrb.mxu0 %v724_v26 }
 0xe1b   :  { %882 = vpow2.f32 %v832_v30  ;;  %v706_v30 = vld [vmem:[%s1266_s5 + $0x50] sm:$0xff] }
 0xe1c   :  { %765 = vmatpush.msrb.mxu0 %v723_v29 }
 0xe21   :  { %v883_v31 = vpop.eup %882 }
 0xe22   :  { %v569_v32 = vadd.f32 1.0, %v883_v31  ;;  %v722_v31 = vld [vmem:[%s1266_s5 + $0xd0] sm:$0xff] }
 0xe23   :  { %766 = vmatpush.msrb.mxu0 %v722_v31 }
 0xe24   :  { %884 = vrcp.f32 %v569_v32  ;;  %v581_v38 = vand.u32 2147483648, %v569_v32  ;;  %vm575_vm14 = vweird.f32 %v569_v32  ;;  %v579_v39 = vand.u32 2147483647, %v569_v32 }
 0xe26   :  { %v582_v40 = vor.u32 1.1754944e-38, %v581_v38  ;;  %vm580_vm1 = vcmp.eq.f32.partialorder %v579_v39, 8.507059e+37 }
 0xe2a   :  { %v885_v33 = vpop.eup %884 }
 0xe2b   :  { %v571_v34 = vmul.f32 %v885_v33, %v569_v32  ;;  %vm576_vm11 = vweird.f32 %v885_v33  ;;  %v705_v32 = vld [vmem:[%s1266_s5 + $0x48] sm:$0xff] }
 0xe2c   :  { %vm577_vm15 = vmor %vm575_vm14, %vm576_vm11 }
 0xe2d   :  { %v572_v35 = vsub.f32 1.0, %v571_v34  ;;  %v704_v34 = vld [vmem:[%s1266_s5 + $0x40] sm:$0xff] }
 0xe2f   :  { %v573_v36 = vmul.f32 %v885_v33, %v572_v35  ;;  %v720_v35 = vld [vmem:[%s1266_s5 + $0xc0] sm:$0xff] }
 0xe31   :  { %v574_v37 = vadd.f32 %v885_v33, %v573_v36 }
 0xe33   :  { %v578_v23 = vsel %vm577_vm15, %v885_v33, %v574_v37  ;;  %v721_v33 = vld [vmem:[%s1266_s5 + $0xc8] sm:$0xff] }
 0xe34   :  { %v583_v42 = vsel %vm580_vm1, %v582_v40, %v578_v23  ;;  %767 = vmatpush.msrb.mxu0 %v721_v33 }
 0xe35   :  { %v598_v47 = vsub.f32 1.0, %v583_v42  ;;  %v606_v50 = vmul.f32 %v604_v48, %v583_v42  ;;  %v716_v48 = vld [vmem:[%s1266_s5 + $0xa0] sm:$0xff] }
 0xe36   :  { %768 = vmatpush.msrb.mxu0 %v720_v35 }
 0xe8b   :  { %v589_v41 = vpop.permute.xlu1 %588 }
 0xe8c   :  { %v591_v43 = vmul.f32 %v589_v41, %v583_v42  ;;  %v703_v41 = vld [vmem:[%s1266_s5 + $0x38] sm:$0xff] }
 0xe8d   :  { %v719_v42 = vld [vmem:[%s1266_s5 + $0xb8] sm:$0xff] }
 0xe8e   :  { %593 = vrot.lane.b32.xlu2 %v591_v43, %s924_s22  ;;  %769 = vmatpush.msrb.mxu0 %v719_v42  ;;  %v702_v43 = vld [vmem:[%s1266_s5 + $0x30] sm:$0xff] }
 0xee8   :  { %v594_v44 = vpop.permute.xlu2 %593 }
 0xee9   :  { %v596_v45 = vadd.f32 %v594_v44, %v1122_v27  ;;  %v718_v44 = vld [vmem:[%s1266_s5 + $0xb0] sm:$0xff] }
 0xeea   :  { %770 = vmatpush.msrb.mxu0 %v718_v44 }
 0xeeb   :  { %886 = vtanh.f32 %v596_v45  ;;  %v701_v45 = vld [vmem:[%s1266_s5 + $0x28] sm:$0xff] }
 0xef1   :  { %v887_v46 = vpop.eup %886 }
 0xef2   :  { %600 = vrot.lane.b32.xlu0 %v887_v46, %s926_s3  ;;  %v717_v46 = vld [vmem:[%s1266_s5 + $0xa8] sm:$0xff] }
 0xef3   :  { %771 = vmatpush.msrb.mxu0 %v717_v46 }
 0xef5   :  { %772 = vmatpush.msrb.mxu0 %v716_v48 }
 0xf64   :  { %v601_v49 = vpop.permute.xlu0 %600 }
 0xf65   :  { %v603_v51 = vmul.f32 %v601_v49, %v598_v47  ;;  %v700_v47 = vld [vmem:[%s1266_s5 + $0x20] sm:$0xff]  ;;  %v699_v49 = vld [vmem:[%s1266_s5 + $0x18] sm:$0xff] }
 0xf67   :  { %v607_v52 = vadd.f32 %v606_v50, %v603_v51  ;;  %v715_v50 = vld [vmem:[%s1266_s5 + $0x98] sm:$0xff]  ;;  %v698_v51 = vld [vmem:[%s1266_s5 + $0x10] sm:$0xff] }
 0xf68   :  { %773 = vmatpush.msrb.mxu0 %v715_v50 }
 0xf69   :  { %v616_v53 = vrot.slane %v607_v52, 4  ;;  %609 = vst.sshfl [vmem:[#allocation1] sm:$0xff pattern:$0x73625140] %v607_v52  ;;  %v683_v7 = vrot.slane %v607_v52, 6  ;;  %v714_v52 = vld [vmem:[%s1266_s5 + $0x90] sm:$0xff] }
 0xf6a   :  { %774 = vmatpush.msrb.mxu0 %v714_v52 }
 0xf6b   :  { %617 = vrot.lane.b32.xlu1 %v616_v53, %s926_s3  ;;  %v697_v53 = vld [vmem:[%s1266_s5 + $0x8] sm:$0xff] }
 0xf70   :  { %v611_v12 = vld [vmem:[#allocation1 + $0x2] ss:$4 sm:$0xff] }
 0xfdd   :  { %v618_v54 = vpop.permute.xlu1 %617 }
 0xfde   :  { %833 = vmatmul.msk.f32.vlgmr.msra.gmra.mxu2 %vm82_vm6, %v618_v54  ;;  %v713_v54 = vld [vmem:[%s1266_s5 + $0x88] sm:$0xff] }
 0xfdf   :  { %775 = vmatpush.msrb.mxu0 %v713_v54 }
0x1061   :  { %v638_v55 = vpop.f32.mrf.mxu2 }
0x1062   :  { %v642_v56 = vrot.slane %v638_v55, 2  ;;  %v664_v57 = vadd.f32 %v638_v55, %v1065_v20  ;;  %v696_v55 = vld [vmem:[%s1266_s5] sm:$0xff] }
0x1064   :  { %v644_v58 = vadd.f32 %v642_v56, %v1122_v27  ;;  %v666_v59 = vrot.slane %v664_v57, 2  ;;  %v712_v56 = vld [vmem:[%s1266_s5 + $0x80] sm:$0xff]  ;;  %v845_v57 = vld [vmem:[#allocation3] ss:$0 sm:$0xff] }
0x1065   :  { %776 = vmatpush.msrb.mxu0 %v712_v56 }
0x1066   :  { %v834_v60 = vmul.f32 -1.442695, %v644_v58  ;;  %667 = vrot.lane.b32.xlu2 %v666_v59, %s924_s22  ;;  %v928_v58 = vmov 0  }
0x1067   :  { %842 = vset.pattern.permute.xlu0 %v928_v58 }
0x1068   :  { %888 = vpow2.f32 %v834_v60 }
0x106e   :  { %v889_v61 = vpop.eup %888  ;;  %307 = vrot.lane.b32.xlu2 %v1111_v18, %s927_s0 }
0x106f   :  { %v648_v62 = vadd.f32 1.0, %v889_v61 }
0x1071   :  { %890 = vrcp.f32 %v648_v62  ;;  %v660_v2 = vand.u32 2147483648, %v648_v62  ;;  %v658_v20 = vand.u32 2147483647, %v648_v62  ;;  %vm654_vm2 = vweird.f32 %v648_v62 }
0x1073   :  { %v661_v5 = vor.u32 1.1754944e-38, %v660_v2  ;;  %vm659_vm4 = vcmp.eq.f32.partialorder %v658_v20, 8.507059e+37 }
0x1077   :  { %v891_v63 = vpop.eup %890 }
0x1078   :  { %v650_v0 = vmul.f32 %v891_v63, %v648_v62  ;;  %vm655_vm6 = vweird.f32 %v891_v63 }
0x1079   :  { %vm656_vm3 = vmor %vm654_vm2, %vm655_vm6 }
0x107a   :  { %v651_v1 = vsub.f32 1.0, %v650_v0 }
0x107c   :  { %v652_v3 = vmul.f32 %v891_v63, %v651_v1 }
0x107e   :  { %v653_v4 = vadd.f32 %v891_v63, %v652_v3 }
0x1080   :  { %v657_v6 = vsel %vm656_vm3, %v891_v63, %v653_v4 }
0x1081   :  { %v662_v8 = vsel %vm659_vm4, %v661_v5, %v657_v6 }
0x1082   :  { %v685_v9 = vmul.f32 %v683_v7, %v662_v8  ;;  %v677_v36 = vsub.f32 1.0, %v662_v8 }
0x10c0   :  { %v668_v10 = vpop.permute.xlu2 %667 }
0x10c1   :  { %v670_v18 = vmul.f32 %v668_v10, %v662_v8 }
0x10c3   :  { %672 = vrot.lane.b32.xlu0 %v670_v18, %s924_s22 }
0x10c8   :  { %v308_v11 = vpop.permute.xlu2 %307 }
0x10c9   :  { %311 = vst.msk [vmem:[#allocation2] sm:$0x3] %vm310_vm0, %v308_v11 }
0x10cb   :  { %612 = vrot.lane.b32.xlu0 %v611_v12, %s927_s0 }
0x10d3   :  { %732 = vperm.xlu0 %842, %v845_v57  }
0x1135   :  { %v673_v13 = vpop.permute.xlu0 %672 }
0x1136   :  { %v675_v14 = vadd.f32 %v673_v13, %v1122_v27  ;;  %v710_v27 = vld [vmem:[%s1266_s5 + $0x70] sm:$0xff] }
0x1137   :  { %742 = vmatpush.msra.mxu3 %v710_v27 }
0x1138   :  { %892 = vtanh.f32 %v675_v14 }
0x113d   :  { %v613_v15 = vpop.permute.xlu0 %612 }
0x113e   :  { %v893_v16 = vpop.eup %892  ;;  %615 = vst.msk [vmem:[#allocation2 + $0x2] sm:$0x3] %vm310_vm0, %v613_v15 }
0x113f   :  { %679 = vrot.lane.b32.xlu1 %v893_v16, %s926_s3 }
0x1145   :  { %v733_v63 = vpop.permute.xlu0 %732 }
0x1147   :  { %387 = vrot.lane.b32.xlu1 %v1137_v17, %s924_s22  ;;  %v709_v17 = vld [vmem:[%s1266_s5 + $0x68] sm:$0xff]  ;;  %s929_s5 = smov [#allocation4]  }
0x1148   :  { %743 = vmatpush.msra.mxu3 %v709_v17  ;;  %s807_s4 = sshll.u32 %s929_s5, 4  ;;  %s808_s4 = int_to_ptr.vmem [resolvable:$true] %s807_s4 }
0x114a   :  { %744 = vmatpush.msra.mxu3 %v708_v24 }
0x114c   :  { %745 = vmatpush.msra.mxu3 %v707_v28 }
0x114e   :  { %746 = vmatpush.msra.mxu3 %v706_v30 }
0x1150   :  { %747 = vmatpush.msra.mxu3 %v705_v32 }
0x1152   :  { %748 = vmatpush.msra.mxu3 %v704_v34 }
0x1154   :  { %749 = vmatpush.msra.mxu3 %v703_v41 }
0x1156   :  { %750 = vmatpush.msra.mxu3 %v702_v43 }
0x1158   :  { %751 = vmatpush.msra.mxu3 %v701_v45 }
0x115a   :  { %752 = vmatpush.msra.mxu3 %v700_v47 }
0x115c   :  { %753 = vmatpush.msra.mxu3 %v699_v49 }
0x115e   :  { %754 = vmatpush.msra.mxu3 %v698_v51 }
0x1160   :  { %755 = vmatpush.msra.mxu3 %v697_v53 }
0x1162   :  { %756 = vmatpush.msra.mxu3 %v696_v55 }
0x11b1   :  { %v680_v37 = vpop.permute.xlu1 %679 }
0x11b2   :  { %v682_v38 = vmul.f32 %v680_v37, %v677_v36 }
0x11b4   :  { %v686_v39 = vadd.f32 %v685_v9, %v682_v38 }
0x11b6   :  { %688 = vst.sshfl [vmem:[#allocation1] sm:$0xff pattern:$0x73625140] %v686_v39 }
0x11b9   :  { %v388_v23 = vpop.permute.xlu1 %387 }
0x11ba   :  { %391 = vst.msk [vmem:[#allocation2] sm:$0x3] %vm390_vm7, %v388_v23 }
0x11bd   :  { %v690_v40 = vld [vmem:[#allocation1 + $0x3] ss:$4 sm:$0xff] }
0x11be   :  { %691 = vrot.lane.b32.xlu2 %v690_v40, %s924_s22 }
0x1218   :  { %v692_v59 = vpop.permute.xlu2 %691 }
0x1219   :  { %694 = vst.msk [vmem:[#allocation2 + $0x2] sm:$0x3] %vm390_vm7, %v692_v59 }
0x1220   :  { %v695_v60 = vld [vmem:[#allocation2] sm:$0xf] }
0x1221   :  { %736 = vst [vmem:[#allocation1] ss:$4 sm:$0xff] %v695_v60 }
0x1228   :  { %v737_v61 = vld.sshfl [vmem:[#allocation1] sm:$0xff pattern:$0x73625140]  ;;  %v738_v62 = vld.sshfl [vmem:[#allocation1 + $0x8] sm:$0xff pattern:$0x73625140] }
0x1229   :  { %757 = vmatmul.f32.vlgmr.msra.gmra.mxu3 %v737_v61  ;;  %777 = vmatmul.f32.vlgmr.msrb.gmra.mxu0 %v738_v62 }
0x12a6   :  { %v778_v2 = vpop.f32.mrf.mxu0 }
0x12ac   :  { %v758_v0 = vpop.f32.mrf.mxu3 }
0x12ad   :  { %v759_v1 = vadd.f32 %v758_v0, %v733_v63 }
0x12af   :  { %v779_v3 = vadd.f32 %v778_v2, %v759_v1 }
0x12b1   :  { %v835_v20 = vmul.f32 -1.442695, %v779_v3 }
0x12b3   :  { %894 = vpow2.f32 %v835_v20 }
0x12b9   :  { %v895_v4 = vpop.eup %894 }
0x12ba   :  { %v784_v5 = vadd.f32 1.0, %v895_v4 }
0x12bc   :  { %896 = vrcp.f32 %v784_v5  ;;  %v796_v9 = vand.u32 2147483648, %v784_v5  ;;  %v794_v18 = vand.u32 2147483647, %v784_v5  ;;  %vm790_vm9 = vweird.f32 %v784_v5 }
0x12be   :  { %v797_v12 = vor.u32 1.1754944e-38, %v796_v9  ;;  %vm795_vm12 = vcmp.eq.f32.partialorder %v794_v18, 8.507059e+37 }
0x12c2   :  { %v897_v6 = vpop.eup %896 }
0x12c3   :  { %v786_v7 = vmul.f32 %v897_v6, %v784_v5  ;;  %vm791_vm8 = vweird.f32 %v897_v6 }
0x12c4   :  { %vm792_vm5 = vmor %vm790_vm9, %vm791_vm8 }
0x12c5   :  { %v787_v8 = vsub.f32 1.0, %v786_v7 }
0x12c7   :  { %v788_v10 = vmul.f32 %v897_v6, %v787_v8 }
0x12c9   :  { %v789_v11 = vadd.f32 %v897_v6, %v788_v10 }
0x12cb   :  { %v793_v13 = vsel %vm792_vm5, %v897_v6, %v789_v11 }
0x12cc   :  { %v798_v14 = vsel %vm795_vm12, %v797_v12, %v793_v13 }
0x12cd   :  { %801 = vst.msk [vmem:[#allocation4] sm:$0x3] %vm800_vm10, %v798_v14 }
0x12ce   :  { %812 = dma.vmem_to_hbm [thread:$0]  %s808_s4, 32, %s810_s25, [#allocation5]  }
0x12cf   :  { %922 = dma.done.wait [#allocation5], 32  }
0x12d0   :  { %923 = vsyncadd [#allocation5], 4294967264 }
0x12d1   :  { %817 = vsyncpa [#allocation5], 1 }

</bundles_post_ra>
